<compile_context>
chip_gen: v7x
topology: tpu7x:2x2x1
jax: 0.10.0
libtpu: 0.0.40
codegen_flags: <defaults>
</compile_context>

<pallas_src>
import functools

import jax
import jax.numpy as jnp
from jax.experimental import pallas as pl
from jax.experimental.pallas import tpu as pltpu


# ----------------------------- Pallas kernel ------------------------------

def _mlp_kernel(num_layers, *refs):
    """refs = (x_ref, w0, b0, w1, b1, ..., o_ref). Layer loop is unrolled.

    Weights are bf16 (MXU fast path); the activation is kept in f32 and cast
    to bf16 only at each dot input.  MXU accumulates in f32 via
    preferred_element_type; bias-add / ReLU run in f32 on the VPU.
    """
    x_ref = refs[0]
    o_ref = refs[-1]
    h = x_ref[...]                                        # f32 [n, d0]
    for i in range(num_layers):                           # statically unrolled
        w = refs[1 + 2 * i][...]                          # bf16 [k, m]
        b = refs[2 + 2 * i][...]                          # f32  [1, m]
        h = jnp.dot(h.astype(jnp.bfloat16), w,
                    preferred_element_type=jnp.float32) + b
        h = jnp.maximum(h, 0.0)                           # ReLU (every layer, incl. last)
    o_ref[...] = h.astype(o_ref.dtype)


def _full_spec(shape):
    """Full-array block (exempt from the (8,128) divisibility rule)."""
    nd = len(shape)
    return pl.BlockSpec(shape, lambda i, _nd=nd: (0,) * _nd)


def mlp_forward(x, device_params):
    """Fused forward over all layers in one pallas_call.

    x: [n, d0] f32 (unpadded).
    device_params: list of (w_bf16 [k, m], b_f32 [1, m]) at their real shapes.
    """
    num_layers = len(device_params)
    n = x.shape[0]
    d_out = device_params[-1][0].shape[1]

    args = [x]
    for w, b in device_params:
        args.append(w)
        args.append(b)

    # Cost estimate on the true (unpadded) shapes.
    flops = sum(2 * n * w.shape[0] * w.shape[1] for w, _ in device_params)
    bytes_accessed = (sum(int(a.size) * a.dtype.itemsize for a in args)
                      + n * d_out * 4)

    kernel = functools.partial(_mlp_kernel, num_layers)
    return pl.pallas_call(
        kernel,
        grid=(1,),
        in_specs=[_full_spec(a.shape) for a in args],
        out_specs=_full_spec((n, d_out)),
        out_shape=jax.ShapeDtypeStruct((n, d_out), jnp.float32),
        compiler_params=pltpu.CompilerParams(
            dimension_semantics=("arbitrary",)),
        cost_estimate=pl.CostEstimate(
            flops=flops, transcendentals=0, bytes_accessed=bytes_accessed),
    )(*args)


# --------------------------- parameter creation ----------------------------

def _linear_params(key, d_in, d_out):
    """PyTorch nn.Linear default init: U(-1/sqrt(in), 1/sqrt(in)).
    Weight returned pre-transposed to [d_in, d_out]; bias is [1, d_out]."""
    kw, kb = jax.random.split(key)
    bound = 1.0 / jnp.sqrt(jnp.float32(d_in))
    w = jax.random.uniform(kw, (d_in, d_out), jnp.float32, -bound, bound)
    b = jax.random.uniform(kb, (1, d_out), jnp.float32, -bound, bound)
    return w, b


def init_params(key, full_dim):
    dim1, dim2 = full_dim[:-1], full_dim[1:]
    params = []
    for k_in, m_out in zip(dim1, dim2):
        key, kl = jax.random.split(key)
        params.append(_linear_params(kl, k_in, m_out))
    return params


def to_device_params(params):
    """bf16 weights (MXU operand dtype), f32 biases. Real shapes, no padding."""
    return [(w.astype(jnp.bfloat16), b) for w, b in params]


# ------------------------------ forward pass -------------------------------

def forward(x, device_params):
    return mlp_forward(x, device_params)


# pure-JAX references
def forward_ref_f32(x, params):
    """Exact f32 math of the PyTorch module's forward."""
    out = x
    for w, b in params:
        out = jnp.maximum(out @ w + b, 0.0)
    return out


def forward_ref_bf16(x, device_params):
    """Same bf16-operand / f32-accumulate arithmetic as the kernel."""
    out = x
    for w, b in device_params:
        out = jnp.dot(out.astype(jnp.bfloat16), w,
                      preferred_element_type=jnp.float32) + b
        out = jnp.maximum(out, 0.0)
    return out


# ----------------------------------- main -----------------------------------

if __name__ == "__main__":
    # full_dim analogous to the PyTorch constructor arg: 4 Linear+ReLU layers.
    full_dim = (16, 32, 16, 32, 16)
    batch = 2

    root = jax.random.PRNGKey(0)
    k_params, k_x = jax.random.split(root)
    params = init_params(k_params, full_dim)
    device_params = to_device_params(params)
    x = jax.random.normal(k_x, (batch, full_dim[0]), jnp.float32)

    out = forward(x, device_params)
    out = jax.block_until_ready(out)

    assert out.shape == (batch, full_dim[-1])

    # Tight check against a reference using the identical bf16/f32 arithmetic.
    ref_bf16 = forward_ref_bf16(x, device_params)
    assert jnp.allclose(out, ref_bf16, atol=1e-3, rtol=1e-3), \
        "mismatch vs bf16-arithmetic reference"

    # Loose check against the exact f32 PyTorch-equivalent forward
    # (difference is only bf16 operand rounding).
    ref_f32 = forward_ref_f32(x, params)
    assert jnp.allclose(out, ref_f32, atol=5e-2, rtol=5e-2), \
        "mismatch vs f32 reference"

    print("KERNEL_OK")
</pallas_src>

<mosaic_0001>
module attributes {stable_mosaic.version = 11 : i64} {
  func.func @_mlp_kernel(%arg0: i32, %arg1: memref<2x16xf32, #tpu.memory_space<vmem>>, %arg2: memref<16x32xbf16, #tpu.memory_space<vmem>>, %arg3: memref<1x32xf32, #tpu.memory_space<vmem>>, %arg4: memref<32x16xbf16, #tpu.memory_space<vmem>>, %arg5: memref<1x16xf32, #tpu.memory_space<vmem>>, %arg6: memref<16x32xbf16, #tpu.memory_space<vmem>>, %arg7: memref<1x32xf32, #tpu.memory_space<vmem>>, %arg8: memref<32x16xbf16, #tpu.memory_space<vmem>>, %arg9: memref<1x16xf32, #tpu.memory_space<vmem>>, %arg10: memref<2x16xf32, #tpu.memory_space<vmem>>) attributes {dimension_semantics = [#tpu.dimension_semantics<arbitrary>], iteration_bounds = array<i64: 1>, scalar_prefetch = 0 : i64, scratch_operands = 0 : i64, tpu.core_type = #tpu.core_type<tc>, window_params = [{pipeline_mode = #tpu.pipeline_mode<synchronous>, transform_indices = @transform_0, window_bounds = array<i64: 2, 16>}, {pipeline_mode = #tpu.pipeline_mode<synchronous>, transform_indices = @transform_1, window_bounds = array<i64: 16, 32>}, {pipeline_mode = #tpu.pipeline_mode<synchronous>, transform_indices = @transform_2, window_bounds = array<i64: 1, 32>}, {pipeline_mode = #tpu.pipeline_mode<synchronous>, transform_indices = @transform_3, window_bounds = array<i64: 32, 16>}, {pipeline_mode = #tpu.pipeline_mode<synchronous>, transform_indices = @transform_4, window_bounds = array<i64: 1, 16>}, {pipeline_mode = #tpu.pipeline_mode<synchronous>, transform_indices = @transform_5, window_bounds = array<i64: 16, 32>}, {pipeline_mode = #tpu.pipeline_mode<synchronous>, transform_indices = @transform_6, window_bounds = array<i64: 1, 32>}, {pipeline_mode = #tpu.pipeline_mode<synchronous>, transform_indices = @transform_7, window_bounds = array<i64: 32, 16>}, {pipeline_mode = #tpu.pipeline_mode<synchronous>, transform_indices = @transform_8, window_bounds = array<i64: 1, 16>}, {pipeline_mode = #tpu.pipeline_mode<synchronous>, transform_indices = @transform_9, window_bounds = array<i64: 2, 16>}]} {
    %c0 = arith.constant 0 : index
    %c0_0 = arith.constant 0 : index
    %0 = vector.load %arg1[%c0, %c0_0] : memref<2x16xf32, #tpu.memory_space<vmem>>, vector<2x16xf32>
    %c0_1 = arith.constant 0 : index
    %c0_2 = arith.constant 0 : index
    %1 = vector.load %arg2[%c0_1, %c0_2] : memref<16x32xbf16, #tpu.memory_space<vmem>>, vector<16x32xbf16>
    %c0_3 = arith.constant 0 : index
    %c0_4 = arith.constant 0 : index
    %2 = vector.load %arg3[%c0_3, %c0_4] : memref<1x32xf32, #tpu.memory_space<vmem>>, vector<1x32xf32>
    %3 = arith.truncf %0 : vector<2x16xf32> to vector<2x16xbf16>
    %cst = arith.constant dense<0.000000e+00> : vector<2x32xf32>
    %4 = tpu.matmul %3, %1, %cst {dimension_numbers = #tpu.dot_dimension_numbers<[1], [0], [0], [1], [0, 0, 1, 1], [], []>} : vector<2x16xbf16>, vector<16x32xbf16>, vector<2x32xf32> -> vector<2x32xf32>
    %5 = vector.broadcast %2 : vector<1x32xf32> to vector<2x32xf32>
    %6 = arith.addf %4, %5 : vector<2x32xf32>
    %cst_5 = arith.constant 0.000000e+00 : f32
    %7 = vector.broadcast %cst_5 : f32 to vector<2x32xf32>
    %8 = arith.maximumf %6, %7 : vector<2x32xf32>
    %c0_6 = arith.constant 0 : index
    %c0_7 = arith.constant 0 : index
    %9 = vector.load %arg4[%c0_6, %c0_7] : memref<32x16xbf16, #tpu.memory_space<vmem>>, vector<32x16xbf16>
    %c0_8 = arith.constant 0 : index
    %c0_9 = arith.constant 0 : index
    %10 = vector.load %arg5[%c0_8, %c0_9] : memref<1x16xf32, #tpu.memory_space<vmem>>, vector<1x16xf32>
    %11 = arith.truncf %8 : vector<2x32xf32> to vector<2x32xbf16>
    %cst_10 = arith.constant dense<0.000000e+00> : vector<2x16xf32>
    %12 = tpu.matmul %11, %9, %cst_10 {dimension_numbers = #tpu.dot_dimension_numbers<[1], [0], [0], [1], [0, 0, 1, 1], [], []>} : vector<2x32xbf16>, vector<32x16xbf16>, vector<2x16xf32> -> vector<2x16xf32>
    %13 = vector.broadcast %10 : vector<1x16xf32> to vector<2x16xf32>
    %14 = arith.addf %12, %13 : vector<2x16xf32>
    %cst_11 = arith.constant 0.000000e+00 : f32
    %15 = vector.broadcast %cst_11 : f32 to vector<2x16xf32>
    %16 = arith.maximumf %14, %15 : vector<2x16xf32>
    %c0_12 = arith.constant 0 : index
    %c0_13 = arith.constant 0 : index
    %17 = vector.load %arg6[%c0_12, %c0_13] : memref<16x32xbf16, #tpu.memory_space<vmem>>, vector<16x32xbf16>
    %c0_14 = arith.constant 0 : index
    %c0_15 = arith.constant 0 : index
    %18 = vector.load %arg7[%c0_14, %c0_15] : memref<1x32xf32, #tpu.memory_space<vmem>>, vector<1x32xf32>
    %19 = arith.truncf %16 : vector<2x16xf32> to vector<2x16xbf16>
    %cst_16 = arith.constant dense<0.000000e+00> : vector<2x32xf32>
    %20 = tpu.matmul %19, %17, %cst_16 {dimension_numbers = #tpu.dot_dimension_numbers<[1], [0], [0], [1], [0, 0, 1, 1], [], []>} : vector<2x16xbf16>, vector<16x32xbf16>, vector<2x32xf32> -> vector<2x32xf32>
    %21 = vector.broadcast %18 : vector<1x32xf32> to vector<2x32xf32>
    %22 = arith.addf %20, %21 : vector<2x32xf32>
    %cst_17 = arith.constant 0.000000e+00 : f32
    %23 = vector.broadcast %cst_17 : f32 to vector<2x32xf32>
    %24 = arith.maximumf %22, %23 : vector<2x32xf32>
    %c0_18 = arith.constant 0 : index
    %c0_19 = arith.constant 0 : index
    %25 = vector.load %arg8[%c0_18, %c0_19] : memref<32x16xbf16, #tpu.memory_space<vmem>>, vector<32x16xbf16>
    %c0_20 = arith.constant 0 : index
    %c0_21 = arith.constant 0 : index
    %26 = vector.load %arg9[%c0_20, %c0_21] : memref<1x16xf32, #tpu.memory_space<vmem>>, vector<1x16xf32>
    %27 = arith.truncf %24 : vector<2x32xf32> to vector<2x32xbf16>
    %cst_22 = arith.constant dense<0.000000e+00> : vector<2x16xf32>
    %28 = tpu.matmul %27, %25, %cst_22 {dimension_numbers = #tpu.dot_dimension_numbers<[1], [0], [0], [1], [0, 0, 1, 1], [], []>} : vector<2x32xbf16>, vector<32x16xbf16>, vector<2x16xf32> -> vector<2x16xf32>
    %29 = vector.broadcast %26 : vector<1x16xf32> to vector<2x16xf32>
    %30 = arith.addf %28, %29 : vector<2x16xf32>
    %cst_23 = arith.constant 0.000000e+00 : f32
    %31 = vector.broadcast %cst_23 : f32 to vector<2x16xf32>
    %32 = arith.maximumf %30, %31 : vector<2x16xf32>
    %c0_24 = arith.constant 0 : index
    %c0_25 = arith.constant 0 : index
    %33 = vector.load %arg10[%c0_24, %c0_25] : memref<2x16xf32, #tpu.memory_space<vmem>>, vector<2x16xf32>
    tpu.vector_store %arg10[%c0_24, %c0_25], %32 {strides = array<i32>} : memref<2x16xf32, #tpu.memory_space<vmem>>, vector<2x16xf32>,
    return
  }
  func.func @transform_0(%arg0: i32) -> (i32, i32) {
    %c0_i32 = arith.constant 0 : i32
    %c0_i32_0 = arith.constant 0 : i32
    %c0_i32_1 = arith.constant 0 : i32
    return %c0_i32, %c0_i32_0 : i32, i32
  }
  func.func @transform_1(%arg0: i32) -> (i32, i32) {
    %c0_i32 = arith.constant 0 : i32
    %c0_i32_0 = arith.constant 0 : i32
    %c0_i32_1 = arith.constant 0 : i32
    return %c0_i32, %c0_i32_0 : i32, i32
  }
  func.func @transform_2(%arg0: i32) -> (i32, i32) {
    %c0_i32 = arith.constant 0 : i32
    %c0_i32_0 = arith.constant 0 : i32
    %c0_i32_1 = arith.constant 0 : i32
    return %c0_i32, %c0_i32_0 : i32, i32
  }
  func.func @transform_3(%arg0: i32) -> (i32, i32) {
    %c0_i32 = arith.constant 0 : i32
    %c0_i32_0 = arith.constant 0 : i32
    %c0_i32_1 = arith.constant 0 : i32
    return %c0_i32, %c0_i32_0 : i32, i32
  }
  func.func @transform_4(%arg0: i32) -> (i32, i32) {
    %c0_i32 = arith.constant 0 : i32
    %c0_i32_0 = arith.constant 0 : i32
    %c0_i32_1 = arith.constant 0 : i32
    return %c0_i32, %c0_i32_0 : i32, i32
  }
  func.func @transform_5(%arg0: i32) -> (i32, i32) {
    %c0_i32 = arith.constant 0 : i32
    %c0_i32_0 = arith.constant 0 : i32
    %c0_i32_1 = arith.constant 0 : i32
    return %c0_i32, %c0_i32_0 : i32, i32
  }
  func.func @transform_6(%arg0: i32) -> (i32, i32) {
    %c0_i32 = arith.constant 0 : i32
    %c0_i32_0 = arith.constant 0 : i32
    %c0_i32_1 = arith.constant 0 : i32
    return %c0_i32, %c0_i32_0 : i32, i32
  }
  func.func @transform_7(%arg0: i32) -> (i32, i32) {
    %c0_i32 = arith.constant 0 : i32
    %c0_i32_0 = arith.constant 0 : i32
    %c0_i32_1 = arith.constant 0 : i32
    return %c0_i32, %c0_i32_0 : i32, i32
  }
  func.func @transform_8(%arg0: i32) -> (i32, i32) {
    %c0_i32 = arith.constant 0 : i32
    %c0_i32_0 = arith.constant 0 : i32
    %c0_i32_1 = arith.constant 0 : i32
    return %c0_i32, %c0_i32_0 : i32, i32
  }
  func.func @transform_9(%arg0: i32) -> (i32, i32) {
    %c0_i32 = arith.constant 0 : i32
    %c0_i32_0 = arith.constant 0 : i32
    %c0_i32_1 = arith.constant 0 : i32
    return %c0_i32, %c0_i32_0 : i32, i32
  }
}

</mosaic_0001>

<bundles_post_ra>
// kernel: tpu_custom_call.1
= control target key start
LH: loop header
LB: loop body
LE: loop exit
PB: predicated region body
PF: predicated region fallthrough
CT: control target
= control target key end

     0   :  { %v394_v1 = vmov 0.0   ;;  %vm51_vm0 = vcmask 130048   ;;  %vm395_vm1 = vmmov 0   ;;  %s500_s0 = inlined_call_operand.vmem [shape: f32[2,16], index: 0, kind: input, shape index: {}]   ;;  %s501_s1 = inlined_call_operand.vmem [shape: bf16[16,32], index: 1, kind: input, shape index: {}]   ;;  %s502_s2 = inlined_call_operand.vmem [shape: f32[1,32], index: 2, kind: input, shape index: {}]   ;;  %s503_s3 = inlined_call_operand.vmem [shape: bf16[32,16], index: 3, kind: input, shape index: {}]   ;;  %s504_s4 = inlined_call_operand.vmem [shape: f32[1,16], index: 4, kind: input, shape index: {}]   ;;  %s505_s5 = inlined_call_operand.vmem [shape: bf16[16,32], index: 5, kind: input, shape index: {}]   ;;  %s506_s6 = inlined_call_operand.vmem [shape: f32[1,32], index: 6, kind: input, shape index: {}]   ;;  %s507_s7 = inlined_call_operand.vmem [shape: bf16[32,16], index: 7, kind: input, shape index: {}]   ;;  %s508_s8 = inlined_call_operand.vmem [shape: f32[1,16], index: 8, kind: input, shape index: {}]   ;;  %s509_s9 = inlined_call_operand.hbm [shape: f32[2,16], index: 9, kind: output, shape index: {}]  }
   0x1   :  { %v364_v0 = vld [vmem:[%s501_s1] sm:$0xff]   ;;  %333 = vmatprep.subr.bf16.mxu0 %v394_v1  ;;  %339 = vmatprep.subr.bf16.mxu1 %v394_v1 }
   0x2   :  { %v34_v2 = vld [vmem:[%s500_s0] sm:$0x3]  ;;  %334 = vmatpush3.bf16.msra.mxu0 %v364_v0  ;;  %335 = vmatprep.mubr.msk.bf16.mxu0 %vm395_vm1, %v394_v1 }
   0x3   :  { %v38_v3 = vpack.c.bf16 %v34_v2, %v34_v2  ;;  %343 = vmatprep.mubr.msk.bf16.mxu1 %vm395_vm1, %v394_v1  ;;  %347 = vmatprep.subr.bf16.mxu0 %v394_v1 }
   0x5   :  { %336 = vmatmul.mubr.msk.bf16.vlgmr.msra.gmra.mrb[0].mxu0 %vm51_vm0, %v38_v3 }
   0x6   :  { %14 = vsyncpa [#allocation3], 0  ;;  %349 = vmatprep.mubr.msk.bf16.mxu0 %vm395_vm1, %v394_v1  ;;  %v365_v4 = vld [vmem:[%s503_s3] sm:$0xff]   ;;  %v366_v5 = vld [vmem:[%s503_s3 + $0x8] sm:$0xff]   ;;  %vm120_vm2 = vcmask 261120   ;;  %vm293_vm3 = vcmask 123904  }
   0x7   :  { %340 = vmatpush3.bf16.msra.mxu1 %v365_v4  ;;  %v367_v6 = vld [vmem:[%s505_s5] sm:$0xff]   ;;  %v369_v24 = vld [vmem:[%s507_s7 + $0x8] sm:$0xff]  }
   0x8   :  { %341 = vmatprep.subr.bf16.mxu1 %v394_v1  ;;  %348 = vmatpush3.bf16.msra.mxu0 %v367_v6  ;;  %v309_v7 = vld [vmem:[%s502_s2] ss:$0 sm:$0xff] }
   0x9   :  { %v368_v15 = vld [vmem:[%s507_s7] sm:$0xff]   ;;  %s396_s7 = smov [#allocation2]  }
   0xa   :  { %v312_v16 = vld [vmem:[%s504_s4] ss:$0 sm:$0xff]  ;;  %s301_s25 = sshll.u32 %s396_s7, 4  ;;  %s302_s25 = int_to_ptr.vmem [resolvable:$true] %s301_s25 }
   0xb   :  { %342 = vmatpush3.bf16.msra.mxu1 %v366_v5  ;;  %v316_v25 = vld [vmem:[%s506_s6] ss:$0 sm:$0xff]  ;;  %s370_s6 = scalar_lea.vmem %s302_s25, 32  ;;  %p375_p1 = scmp.lt.s32.totalorder %s302_s25, %s302_s25 }
   0xc   :  { %353 = vmatprep.subr.bf16.mxu1 %v394_v1  ;;  %v319_v33 = vld [vmem:[%s508_s8] ss:$0 sm:$0xff]  ;;  %p371_p0 = scmp.ne.s32.totalorder %s302_s25, %s370_s6  ;;  %p376_p2 = scmp.lt.s32.totalorder %s370_s6, %s370_s6 }
   0xe   :  { %p377_p3 = por %p376_p2, %p375_p1 }
  0x10   :  { %p378_p4 = pnand %p377_p3, %p371_p0 }
  0xd8   :  { %v89_v8 = vpop.f32.mrb[0].mxu0 }
  0xd9   :  { %v90_v9 = vadd.f32 %v309_v7, %v89_v8  ;;  %v337_v10 = vpop.f32.mrb[1].mxu0 }
  0xda   :  { %v92_v11 = vpop.f32.mrb[2].mxu0 }
  0xdb   :  { %v95_v12 = vmax.f32 %v90_v9, 0.0  ;;  %v338_v13 = vpop.f32.mrb[3].mxu0 }
  0xdd   :  { %v101_v14 = vpack.c.bf16 %v95_v12, %v95_v12 }
  0xdf   :  { %344 = vmatmul.mubr.msk.bf16.vlgmr.msra.gmra.mrb[0].mxu1 %vm120_vm2, %v101_v14 }
  0xe0   :  { %357 = vmatprep.mubr.msk.bf16.mxu1 %vm395_vm1, %v394_v1  ;;  %354 = vmatpush3.bf16.msra.mxu1 %v368_v15 }
  0xe1   :  { %355 = vmatprep.subr.bf16.mxu1 %v394_v1 }
  0xe4   :  { %356 = vmatpush3.bf16.msra.mxu1 %v369_v24 }
 0x1b2   :  { %v158_v17 = vpop.f32.mrb[0].mxu1 }
 0x1b3   :  { %v159_v18 = vadd.f32 %v312_v16, %v158_v17  ;;  %v345_v19 = vpop.f32.mrb[1].mxu1 }
 0x1b4   :  { %v161_v20 = vpop.f32.mrb[2].mxu1 }
 0x1b5   :  { %v164_v21 = vmax.f32 %v159_v18, 0.0  ;;  %v346_v22 = vpop.f32.mrb[3].mxu1 }
 0x1b7   :  { %v168_v23 = vpack.c.bf16 %v164_v21, %v164_v21 }
 0x1b9   :  { %350 = vmatmul.mubr.msk.bf16.vlgmr.msra.gmra.mrb[4].mxu0 %vm51_vm0, %v168_v23 }
 0x28c   :  { %v218_v26 = vpop.f32.mrb[4].mxu0 }
 0x28d   :  { %v219_v27 = vadd.f32 %v316_v25, %v218_v26  ;;  %v351_v28 = vpop.f32.mrb[5].mxu0 }
 0x28e   :  { %v221_v29 = vpop.f32.mrb[6].mxu0 }
 0x28f   :  { %v224_v30 = vmax.f32 %v219_v27, 0.0  ;;  %v352_v31 = vpop.f32.mrb[7].mxu0 }
 0x291   :  { %v230_v32 = vpack.c.bf16 %v224_v30, %v224_v30 }
 0x293   :  { %358 = vmatmul.mubr.msk.bf16.vlgmr.msra.gmra.mrb[4].mxu1 %vm120_vm2, %v230_v32 }
 0x366   :  { %v286_v34 = vpop.f32.mrb[4].mxu1 }
 0x367   :  { %v287_v35 = vadd.f32 %v319_v33, %v286_v34  ;;  %v359_v36 = vpop.f32.mrb[5].mxu1 }
 0x368   :  { %v289_v37 = vpop.f32.mrb[6].mxu1 }
 0x369   :  { %v292_v38 = vmax.f32 %v287_v35, 0.0  ;;  %v360_v39 = vpop.f32.mrb[7].mxu1 }
 0x36b   :  { %294 = vst.msk [vmem:[#allocation2] sm:$0x3] %vm293_vm3, %v292_v38 }
 0x36c   :  { %381 = shalt.err (!%p378_p4)
}
 0x36d   :  { %s382_s27 = scalar_lea.hbm %s509_s9, 32 }
 0x36e   :  { %p383_p5 = scmp.ne.s32.totalorder %s509_s9, %s382_s27  ;;  %p386_p6 = scmp.lt.u32.totalorder %s382_s27, %s509_s9 }
 0x370   :  { %p388_p7 = pnand %p386_p6, %p383_p5 }
 0x372   :  { %391 = shalt.err (!%p388_p7)
}
 0x373   :  { %304 = dma.vmem_to_hbm [thread:$0]  %s302_s25, 32, %s509_s9, [#allocation3]  }
 0x374   :  { %392 = dma.done.wait [#allocation3], 32  }
 0x375   :  { %393 = vsyncadd [#allocation3], 4294967264 }
 0x376   :  { %308 = vsyncpa [#allocation3], 1 }

</bundles_post_ra>
